<compile_context>
chip_gen: v5e
topology: v5e:2x2
jax: 0.10.0
libtpu: 0.0.40
codegen_flags: <defaults>
</compile_context>

<pallas_src>
import jax
import jax.numpy as jnp
from jax.experimental import pallas as pl
from jax.experimental.pallas import tpu as pltpu


# ----------------------------------------------------------------------------- kernel


def _self_attention_kernel(x_ref, w_ref, b_ref, o_ref):
    # x_ref: (bt, S, D)   bf16 batch tile
    # w_ref: (D, 3H)      bf16 fused [Wq/sqrt(H) | Wk | Wv]   (resident across grid)
    # b_ref: (1, 3H)      f32  fused [bq/sqrt(H) | bk | bv]   (resident across grid)
    # o_ref: (bt, S, H)   f32  output tile
    bt, seq, d_in = x_ref.shape
    h = o_ref.shape[-1]

    # Fused QKV projection on the flattened (bt*S, D) slab -> one wide MXU pass,
    # bf16 operands, f32 accumulation.  Scale is already folded into the Q weights.
    x2 = x_ref[...].reshape(bt * seq, d_in)
    qkv = jnp.dot(x2, w_ref[...], preferred_element_type=jnp.float32) + b_ref[...]
    qkv = qkv.reshape(bt, seq, 3 * h)

    q = qkv[:, :, :h].astype(jnp.bfloat16)
    k = qkv[:, :, h:2 * h].astype(jnp.bfloat16)
    v = qkv[:, :, 2 * h:].astype(jnp.bfloat16)

    # Scores: NT contraction on the last dims (no explicit transpose / XLU pass).
    scores = jnp.einsum("bqd,bkd->bqk", q, k, preferred_element_type=jnp.float32)

    # Numerically-stable softmax over keys; reciprocal goes to the (otherwise idle) EUP slot.
    m = jnp.max(scores, axis=-1, keepdims=True)
    e = jnp.exp(scores - m)
    denom = jnp.sum(e, axis=-1, keepdims=True)
    probs = (e * pl.reciprocal(denom, approx=True)).astype(jnp.bfloat16)

    attn = jnp.einsum("bqk,bkd->bqd", probs, v, preferred_element_type=jnp.float32)
    o_ref[...] = attn.astype(o_ref.dtype)


# ----------------------------------------------------------------------------- wrapper


def fuse_qkv_params(wq, bq, wk, bk, wv, bv, scale):
    """Build the fused (D, 3H) bf16 weight and (1, 3H) f32 bias ONCE at model init.

    Folds the 1/sqrt(H) attention scale into the Q projection (weights + bias).
    """
    inv = 1.0 / float(scale)
    w_qkv = jnp.concatenate([wq * inv, wk, wv], axis=1).astype(jnp.bfloat16)
    b_qkv = jnp.concatenate([bq * inv, bk, bv]).reshape(1, -1).astype(jnp.float32)
    return w_qkv, b_qkv


def _vmem_footprint_bytes(bt, S, D, H):
    """Rough live-bytes estimate for one grid step (inputs double-buffered)."""
    rows = bt * S
    fp = 2 * rows * D * 2            # double-buffered x tiles (bf16)
    fp += 2 * rows * H * 4           # double-buffered out tiles (f32)
    fp += D * 3 * H * 2 + 3 * H * 4  # resident fused weights (bf16) + bias (f32)
    fp += rows * 3 * H * 4           # qkv (f32)
    fp += 3 * rows * H * 2           # q, k, v (bf16)
    fp += 3 * bt * S * S * 4         # scores, exp, probs (f32)
    fp += rows * H * 4               # attention accumulator (f32)
    return fp


def _auto_bt(B, S, D, H, *, target_rows=256, min_grid_steps=2, vmem_budget=24 << 20):
    """Pick the batch tile: fill MXU rows (bt*S >= target_rows) but keep >=
    min_grid_steps grid steps (v7x: 2 TensorCores) and stay under the VMEM budget."""
    best = 1
    for bt in range(1, B + 1):
        if B % bt != 0:
            continue
        if _vmem_footprint_bytes(bt, S, D, H) > vmem_budget:
            continue
        if B >= min_grid_steps and (B // bt) < min_grid_steps:
            continue
        best = bt
        if bt * S >= target_rows:
            break
    return best


def self_attention(x, w_qkv, b_qkv, *, bt=None):
    """x: [B, S, D] f32; w_qkv: [D, 3H] bf16 (fused, pre-scaled); b_qkv: [1, 3H] f32.

    Returns f32 [B, S, H].  bt = batch elements merged per grid step (B % bt == 0).
    """
    B, S, D = x.shape
    three_h = w_qkv.shape[1]
    H = three_h // 3

    if bt is None:
        bt = _auto_bt(B, S, D, H)
    assert B % bt == 0, "bt must divide the batch size"

    # bf16 x halves the HBM->VMEM traffic for the activation tiles (cast fuses with
    # whatever produced x under jit).
    x_bf16 = x.astype(jnp.bfloat16)

    fp = _vmem_footprint_bytes(bt, S, D, H)
    vmem_limit = int(max(32 << 20, min(2 * fp, 64 << 20)))

    out = pl.pallas_call(
        _self_attention_kernel,
        out_shape=jax.ShapeDtypeStruct((B, S, H), jnp.float32),
        grid_spec=pltpu.PrefetchScalarGridSpec(
            num_scalar_prefetch=0,
            grid=(B // bt,),
            in_specs=[
                pl.BlockSpec((bt, S, D), lambda b: (b, 0, 0)),        # x tile
                pl.BlockSpec((D, three_h), lambda b: (0, 0)),         # fused weights (resident)
                pl.BlockSpec((1, three_h), lambda b: (0, 0)),         # fused bias (resident)
            ],
            out_specs=pl.BlockSpec((bt, S, H), lambda b: (b, 0, 0)),
        ),
        compiler_params=pltpu.CompilerParams(
            dimension_semantics=("parallel",),
            vmem_limit_bytes=vmem_limit,
        ),
        # If DMA shows exposed at large B / small per-step compute, add
        # pipeline_mode=pl.Buffered(3) on the x BlockSpec (costs one extra x tile of VMEM).
    )(x_bf16, w_qkv, b_qkv)

    return out


# ----------------------------------------------------------------------------- reference


def self_attention_ref(x, wq, bq, wk, bk, wv, bv, scale):
    hp = jax.lax.Precision.HIGHEST
    q = jnp.dot(x, wq, precision=hp) + bq
    k = jnp.dot(x, wk, precision=hp) + bk
    v = jnp.dot(x, wv, precision=hp) + bv
    scores = jnp.einsum("bqd,bkd->bqk", q, k, precision=hp) / scale
    probs = jax.nn.softmax(scores, axis=-1)
    return jnp.einsum("bqk,bkd->bqd", probs, v, precision=hp)


# ----------------------------------------------------------------------------- test


if __name__ == "__main__":
    B, S, D_in, H = 2, 8, 32, 32
    key = jax.random.PRNGKey(0)
    kx, kq, kbq, kk, kbk, kv, kbv = jax.random.split(key, 7)

    x = jax.random.normal(kx, (B, S, D_in), dtype=jnp.float32)
    # nn.Linear-like uniform(-1/sqrt(fan_in), 1/sqrt(fan_in)) init, deterministic.
    bound = 1.0 / (D_in ** 0.5)
    wq = jax.random.uniform(kq, (D_in, H), jnp.float32, -bound, bound)
    bq = jax.random.uniform(kbq, (H,), jnp.float32, -bound, bound)
    wk = jax.random.uniform(kk, (D_in, H), jnp.float32, -bound, bound)
    bk = jax.random.uniform(kbk, (H,), jnp.float32, -bound, bound)
    wv = jax.random.uniform(kv, (D_in, H), jnp.float32, -bound, bound)
    bv = jax.random.uniform(kbv, (H,), jnp.float32, -bound, bound)
    scale = float(H) ** 0.5

    ref = self_attention_ref(x, wq, bq, wk, bk, wv, bv, scale)

    # "Model init": fuse + pre-scale weights once, outside the per-call path.
    w_qkv, b_qkv = fuse_qkv_params(wq, bq, wk, bk, wv, bv, scale)

    # Tolerance reflects the deliberate bf16 MXU operands (f32 accumulation) plus the
    # approximate EUP reciprocal in the softmax; expected error is a few 1e-3.
    ATOL = RTOL = 2e-2

    # Auto bt (keeps >= 2 grid steps so both v7x TensorCores get work).
    out = jax.block_until_ready(self_attention(x, w_qkv, b_qkv))
    assert out.shape == (B, S, H)
    err = float(jnp.max(jnp.abs(out - ref)))
    assert jnp.allclose(out, ref, atol=ATOL, rtol=RTOL), (
        f"mismatch vs reference (auto bt): max_abs_err={err}")

    # Batch-merged path (bt=B): flattened (bt*S, D) projection slab, single grid step.
    out2 = jax.block_until_ready(self_attention(x, w_qkv, b_qkv, bt=B))
    err2 = float(jnp.max(jnp.abs(out2 - ref)))
    assert jnp.allclose(out2, ref, atol=ATOL, rtol=RTOL), (
        f"mismatch vs reference (bt=B): max_abs_err={err2}")

    print("KERNEL_OK")
</pallas_src>

<mosaic_0001>
module attributes {stable_mosaic.version = 11 : i64} {
  func.func @_self_attention_kernel(%arg0: i32, %arg1: memref<1x8x32xbf16, #tpu.memory_space<vmem>>, %arg2: memref<32x96xbf16, #tpu.memory_space<vmem>>, %arg3: memref<1x96xf32, #tpu.memory_space<vmem>>, %arg4: memref<1x8x32xf32, #tpu.memory_space<vmem>>) attributes {dimension_semantics = [#tpu.dimension_semantics<parallel>], iteration_bounds = array<i64: 2>, scalar_prefetch = 0 : i64, scratch_operands = 0 : i64, tpu.core_type = #tpu.core_type<tc>, window_params = [{transform_indices = @transform_0, window_bounds = array<i64: 1, 8, 32>}, {pipeline_mode = #tpu.pipeline_mode<synchronous>, transform_indices = @transform_1, window_bounds = array<i64: 32, 96>}, {pipeline_mode = #tpu.pipeline_mode<synchronous>, transform_indices = @transform_2, window_bounds = array<i64: 1, 96>}, {transform_indices = @transform_3, window_bounds = array<i64: 1, 8, 32>}]} {
    %c0 = arith.constant 0 : index
    %c0_0 = arith.constant 0 : index
    %c0_1 = arith.constant 0 : index
    %0 = vector.load %arg1[%c0, %c0_0, %c0_1] : memref<1x8x32xbf16, #tpu.memory_space<vmem>>, vector<1x8x32xbf16>
    %1 = vector.shape_cast %0 : vector<1x8x32xbf16> to vector<8x32xbf16>
    %c0_2 = arith.constant 0 : index
    %c0_3 = arith.constant 0 : index
    %2 = vector.load %arg2[%c0_2, %c0_3] : memref<32x96xbf16, #tpu.memory_space<vmem>>, vector<32x96xbf16>
    %cst = arith.constant dense<0.000000e+00> : vector<8x96xf32>
    %3 = tpu.matmul %1, %2, %cst {dimension_numbers = #tpu.dot_dimension_numbers<[1], [0], [0], [1], [0, 0, 1, 1], [], []>} : vector<8x32xbf16>, vector<32x96xbf16>, vector<8x96xf32> -> vector<8x96xf32>
    %c0_4 = arith.constant 0 : index
    %c0_5 = arith.constant 0 : index
    %4 = vector.load %arg3[%c0_4, %c0_5] : memref<1x96xf32, #tpu.memory_space<vmem>>, vector<1x96xf32>
    %5 = vector.broadcast %4 : vector<1x96xf32> to vector<8x96xf32>
    %6 = arith.addf %3, %5 : vector<8x96xf32>
    %7 = vector.shape_cast %6 : vector<8x96xf32> to vector<1x8x96xf32>
    %8 = vector.extract_strided_slice %7 {offsets = [0, 0, 0], sizes = [1, 8, 32], strides = [1, 1, 1]} : vector<1x8x96xf32> to vector<1x8x32xf32>
    %9 = arith.truncf %8 : vector<1x8x32xf32> to vector<1x8x32xbf16>
    %10 = vector.extract_strided_slice %7 {offsets = [0, 0, 32], sizes = [1, 8, 32], strides = [1, 1, 1]} : vector<1x8x96xf32> to vector<1x8x32xf32>
    %11 = arith.truncf %10 : vector<1x8x32xf32> to vector<1x8x32xbf16>
    %12 = vector.extract_strided_slice %7 {offsets = [0, 0, 64], sizes = [1, 8, 32], strides = [1, 1, 1]} : vector<1x8x96xf32> to vector<1x8x32xf32>
    %13 = arith.truncf %12 : vector<1x8x32xf32> to vector<1x8x32xbf16>
    "tpu.trace_start"() <{level = 10 : i32, message = "bqd,bkd->bqk"}> : () -> ()
    %cst_6 = arith.constant dense<0.000000e+00> : vector<1x8x8xf32>
    %14 = tpu.matmul %9, %11, %cst_6 {dimension_numbers = #tpu.dot_dimension_numbers<[2], [2], [1], [1], [0, 0, 0, 1, 1, 1], [0], [0]>} : vector<1x8x32xbf16>, vector<1x8x32xbf16>, vector<1x8x8xf32> -> vector<1x8x8xf32>
    "tpu.trace_stop"() : () -> ()
    %cst_7 = arith.constant dense<0xFF800000> : vector<1x8xf32>
    %15 = vector.multi_reduction <maximumf>, %14, %cst_7 [2] : vector<1x8x8xf32> to vector<1x8xf32>
    %16 = vector.shape_cast %15 : vector<1x8xf32> to vector<1x8x1xf32>
    %17 = vector.broadcast %16 : vector<1x8x1xf32> to vector<1x8x8xf32>
    %18 = arith.subf %14, %17 : vector<1x8x8xf32>
    %19 = math.exp %18 : vector<1x8x8xf32>
    %cst_8 = arith.constant dense<0.000000e+00> : vector<1x8xf32>
    %20 = vector.multi_reduction <add>, %19, %cst_8 [2] : vector<1x8x8xf32> to vector<1x8xf32>
    %21 = vector.shape_cast %20 : vector<1x8xf32> to vector<1x8x1xf32>
    %22 = tpu.reciprocal %21 {approx = true} : vector<1x8x1xf32> -> vector<1x8x1xf32>
    %23 = vector.broadcast %22 : vector<1x8x1xf32> to vector<1x8x8xf32>
    %24 = arith.mulf %19, %23 : vector<1x8x8xf32>
    %25 = arith.truncf %24 : vector<1x8x8xf32> to vector<1x8x8xbf16>
    "tpu.trace_start"() <{level = 10 : i32, message = "bqk,bkd->bqd"}> : () -> ()
    %cst_9 = arith.constant dense<0.000000e+00> : vector<1x8x32xf32>
    %26 = tpu.matmul %25, %13, %cst_9 {dimension_numbers = #tpu.dot_dimension_numbers<[2], [1], [1], [2], [0, 0, 0, 1, 1, 2], [0], [0]>} : vector<1x8x8xbf16>, vector<1x8x32xbf16>, vector<1x8x32xf32> -> vector<1x8x32xf32>
    "tpu.trace_stop"() : () -> ()
    %c0_10 = arith.constant 0 : index
    %c0_11 = arith.constant 0 : index
    %c0_12 = arith.constant 0 : index
    %27 = vector.load %arg4[%c0_10, %c0_11, %c0_12] : memref<1x8x32xf32, #tpu.memory_space<vmem>>, vector<1x8x32xf32>
    tpu.vector_store %arg4[%c0_10, %c0_11, %c0_12], %26 {strides = array<i32>} : memref<1x8x32xf32, #tpu.memory_space<vmem>>, vector<1x8x32xf32>,
    return
  }
  func.func @transform_0(%arg0: i32) -> (i32, i32, i32) {
    %c0_i32 = arith.constant 0 : i32
    %c0_i32_0 = arith.constant 0 : i32
    %c0_i32_1 = arith.constant 0 : i32
    return %arg0, %c0_i32, %c0_i32_0 : i32, i32, i32
  }
  func.func @transform_1(%arg0: i32) -> (i32, i32) {
    %c0_i32 = arith.constant 0 : i32
    %c0_i32_0 = arith.constant 0 : i32
    %c0_i32_1 = arith.constant 0 : i32
    return %c0_i32, %c0_i32_0 : i32, i32
  }
  func.func @transform_2(%arg0: i32) -> (i32, i32) {
    %c0_i32 = arith.constant 0 : i32
    %c0_i32_0 = arith.constant 0 : i32
    %c0_i32_1 = arith.constant 0 : i32
    return %c0_i32, %c0_i32_0 : i32, i32
  }
  func.func @transform_3(%arg0: i32) -> (i32, i32, i32) {
    %c0_i32 = arith.constant 0 : i32
    %c0_i32_0 = arith.constant 0 : i32
    %c0_i32_1 = arith.constant 0 : i32
    return %arg0, %c0_i32, %c0_i32_0 : i32, i32, i32
  }
}

</mosaic_0001>

<bundles_post_ra>
// kernel: tpu_custom_call.1
= control target key start
LH: loop header
LB: loop body
LE: loop exit
PB: predicated region body
PF: predicated region fallthrough
CT: control target
= control target key end

     0   :  { %8 = vsyncpa [#allocation3], 0  ;;  %s798_s0 = inlined_call_operand.hbm [shape: bf16[2,8,32], index: 0, kind: input, shape index: {}]   ;;  %s799_s1 = inlined_call_operand.hbm [shape: bf16[32,96], index: 1, kind: input, shape index: {}]   ;;  %s800_s2 = inlined_call_operand.vmem [shape: f32[1,96], index: 2, kind: input, shape index: {}]   ;;  %s801_s3 = inlined_call_operand.hbm [shape: f32[2,8,32], index: 3, kind: output, shape index: {}]  }
   0x1   :  { %10 = vsyncpa [#allocation3 + $0x1], 0 }
   0x2   :  { %11 = vsyncpa [#allocation6], 0 }
   0x3   :  { %12 = vsyncpa [#allocation4], 0 }
   0x4   :  { %14 = vsyncpa [#allocation4 + $0x1], 0  ;;  %s651_s12 = smov 0   ;;  %s653_s13 = smov 0  }
   0x5   :  { %s655_s14 = smov 0   ;;  %s657_s15 = smov 0  }
   0x6 LB: > { %s130_s18 = sshll.u32 %s799_s1, 4  ;;  %s675_s19 = sadd.s32 4294967295, %s624_s15   ;;  %s624_s15 = sphi %s657_s15, %s811_s15   ;;  %s620_s14 = sphi %s655_s14, %s810_s14   ;;  %s616_s13 = sphi %s653_s13, %s809_s13   ;;  %s612_s12 = sphi %s651_s12, %s808_s12   ;;  %s131_s18 = int_to_ptr.hbm [resolvable:$true] %s130_s18 }
   0x7   : > { %p402_p0 = scmp.ge.s32.totalorder %s624_s15, 1  ;;  %p41_p1 = scmp.eq.s32.totalorder %s675_s19, 0 }
   0x8   : > { %p119_p2 = scmp.lt.s32.totalorder %s624_s15, 3  ;;  %s626_s21 = smov [#allocation5]  }
   0x9   : > { %s132_s22 = sshll.u32 %s626_s21, 4  ;;  %s627_s23 = smov 64   ;;  %s133_s22 = int_to_ptr.vmem [resolvable:$true] %s132_s22 }
   0xa   : > { %p680_p3 = pnand %p402_p0, %p119_p2  ;;  %s628_s24 = smov 4  }
   0xb   : > { %s401_s25 = sadd.s32 4294967294, %s624_s15   ;;  %s691_s26 = sadd.s32 1, %s624_s15  }
   0xc   : > { %p436_p4 = pneg %p680_p3  ;;  %s27_s27 = sadd.s32 1, %s620_s14 }
   0xd   : > { %s24_s28 = ssub.s32 %s624_s15, %s691_s26  ;;  %p34_p7 = scmp.ne.s32.totalorder %s620_s14, %s616_s13 }
   0xe   : > { %p437_p6 = pnand %p436_p4, %p41_p1  ;;  %p25_p8 = scmp.eq.s32.totalorder %s24_s28, 0 }
   0xf   : > { %p35_p9 = scmp.eq.s32.totalorder %s624_s15, 0  ;;  %p40_p10 = scmp.ne.s32.totalorder %s616_s13, %s612_s12 }
  0x10   : > { %439 = dma.hbm_to_vmem [thread:$0]  (!%p437_p6), %s131_s18, 256, %s133_s22, [#allocation6], %s627_s23, %s627_s23, %s628_s24  }
  0x11   : > { %p106_p11 = scmp.eq.s32.totalorder %s675_s19, 1  ;;  %p707_p12 = por %p41_p1, %p40_p10 }
  0x12   : > { %s703_s29 = scalar_select %p25_p8, %s620_s14, %s27_s27  }
  0x13   : > { %p711_p13 = por %p106_p11, %p34_p7  ;;  %p112_p0 = scmp.eq.s32.totalorder %s401_s25, 1 }
  0x14   : > { %p36_p2 = por %p35_p9, %p34_p7  ;;  %s149_s5 = sand.u32 1, %s620_s14  }
  0x15   : > { %p716_p4 = por %p112_p0, %p40_p10  ;;  %p449_p6 = scmp.lt.s32.totalorder %s624_s15, 2 }
  0x16   : > { %s405_s7 = sshll.u32 %s149_s5, 2  ;;  %s406_s8 = sshll.u32 %s624_s15, 2 }
  0x17   : > { %s157_s11 = scalar_lea.hbm %s798_s0, %s406_s8  ;;  %s153_s17 = scalar_lea.vmem [#allocation2], %s405_s7 }
  0x18   : > { %s159_s16 = sshll.u32 %s157_s11, 4  ;;  %s161_s18 = sshll.u32 %s153_s17, 4  ;;  %s160_s16 = int_to_ptr.hbm [resolvable:$true] %s159_s16  ;;  %s162_s18 = int_to_ptr.vmem [resolvable:$true] %s161_s18 }
  0x19   : > { %p725_p8 = pnand %p449_p6, %p36_p2  ;;  %s150_s22 = scalar_lea.sflag [#allocation3], %s149_s5 }
  0x1a   : > { %s524_s23 = sshra.s32 %s160_s16, 4  ;;  %s531_s28 = scalar_lea.hbm %s798_s0, 8  ;;  %s525_s23 = int_to_ptr.hbm [resolvable:$true] %s524_s23 }
  0x1b   : > { %s526_s24 = scalar_lea.hbm %s525_s23, 4  ;;  %p528_p9 = pneg %p725_p8 }
  0x1c   : > { %p527_p7 = scmp.ne.s32.totalorder %s525_s23, %s526_s24  ;;  %p532_p0 = scmp.lt.s32.totalorder %s525_s23, %s798_s0 }
  0x1d   : > { %p533_p2 = scmp.lt.s32.totalorder %s531_s28, %s526_s24 }
  0x1e   : > { %p529_p10 = pnand %p528_p9, %p527_p7 }
  0x1f   : > { %p534_p6 = por %p533_p2, %p532_p0 }
  0x20   : > { %p530_p11 = pneg %p529_p10 }
  0x22   : > { %p535_p5 = pnand %p534_p6, %p530_p11 }
  0x24   : > { %538 = shalt.err (!%p535_p5)
}
  0x25   : > { %443 = dma.hbm_to_vmem [thread:$0]  (!%p725_p8), %s160_s16, 64, %s162_s18, %s150_s22  }
  0x26   : > { %170 = sbr.rel (%p680_p3) target bundleno = 850 (0x352), region = 32  ;;  %s742_s5 = sand.u32 (!%p680_p3), 1, %s616_s13  }
  0x27   : > { %s408_s9 = sshll.u32 (!%p680_p3), %s742_s5, 2  ;;  %s173_s10 = scalar_lea.sflag (!%p680_p3), [#allocation3], %s742_s5 }
  0x28   : > { %s176_s11 = scalar_lea.vmem (!%p680_p3), [#allocation2], %s408_s9 }
  0x2b   : > { %599 = dma.done.wait (%p707_p12), %s173_s10, 64  }
  0x2c   : > { %601 = vsyncadd (%p707_p12), %s173_s10, 4294967232 }
  0x2d   : > { %603 = dma.done.wait (%p41_p1), [#allocation6], 256  }
  0x2e   : > { %605 = vsyncadd (%p41_p1), [#allocation6], 4294967040  ;;  %v427_v0 = vld [vmem:[#allocation5 + $0x8] sm:$0xff]  ;;  %v426_v1 = vld [vmem:[#allocation5] sm:$0xff]  ;;  %vm227_vm0 = vcmask 261120   ;;  %s629_s30 = smov 96  }
  0x2f   : > { %237 = vmatpush.bf16.msra.mxu0 %v427_v0  ;;  %v206_v2 = vld [vmem:[%s176_s11] sm:$0xf]  ;;  %vm269_vm1 = vcmask 64512   ;;  %s630_s17 = smov 64   ;;  %vm287_vm2 = vcmask 1043456   ;;  %s423_s18 = sshll.u32 %s675_s19, 3 }
  0x30   : > { %v489_v3 = vld [vmem:[%s800_s2] ss:$0 sm:$0xff]  ;;  %s410_s21 = sshll.u32 %s742_s5, 3  ;;  %s316_s24 = scalar_lea.hbm %s801_s3, %s423_s18 }
  0x31   : > { %s204_s25 = scalar_lea.vmem [#allocation7], %s410_s21  ;;  %s320_s28 = sshll.u32 %s316_s24, 4  ;;  %s321_s28 = int_to_ptr.hbm [resolvable:$true] %s320_s28 }
  0x32   : > { %s318_s27 = sshll.u32 %s204_s25, 4  ;;  %s306_s7 = scalar_lea.sflag [#allocation4], %s742_s5  ;;  %s319_s27 = int_to_ptr.vmem [resolvable:$true] %s318_s27 }
  0x33   : > { %238 = vmatpush.bf16.msra.mxu0 %v426_v1  ;;  %s568_s8 = sshra.s32 %s321_s28, 4  ;;  %s574_s11 = scalar_lea.hbm %s801_s3, 16  ;;  %s569_s8 = int_to_ptr.hbm [resolvable:$true] %s568_s8 }
  0x34   : > { %s570_s9 = scalar_lea.hbm %s569_s8, 8  ;;  %p575_p12 = scmp.lt.s32.totalorder %s569_s8, %s801_s3 }
  0x35   : > { %p571_p1 = scmp.ne.s32.totalorder %s569_s8, %s570_s9  ;;  %p576_p8 = scmp.lt.s32.totalorder %s574_s11, %s570_s9 }
  0x36   : > { %419 = vmatmul.msk.bf16.vlgmr.msra.gmra.mxu0 %vm227_vm0, %v206_v2 }
  0x37   : > { %p572_p3 = pnand %p571_p1, %p711_p13  ;;  %p577_p7 = por %p576_p8, %p575_p12 }
  0x39   : > { %p573_p5 = pneg %p572_p3 }
  0x3b   : > { %p578_p9 = pnand %p577_p7, %p573_p5 }
  0xb3   : > { %v240_v4 = vpop.f32.mrf.mxu0 }
  0xb4   : > { %v241_v5 = vadd.f32 %v489_v3, %v240_v4 }
  0xb6   : > { %v244_v6 = vpack.c.bf16 %v241_v5, %v241_v5 }
  0xb8   : > { %v246_v7 = vunpack.c.l.b16 %v244_v6 }
  0xba   : > { %v247_v8 = vpack.c.b16 %v246_v7, %v246_v7 }
  0xbb   : > { %v242_v9 = vpop.f32.mrf.mxu0 }
  0xbc   : > { %248 = vrot.lane.b32.xlu0 %v247_v8, %s629_s30 }
 0x12e   : > { %v249_v10 = vpop.permute.xlu0 %248 }
 0x12f   : > { %v254_v11 = vsel %vm227_vm0, %v249_v10, 0 }
 0x130   : > { %263 = vmatpush.bf16.xpose.msra.mxu1 %v254_v11 }
 0x137   : > { %420 = vmatmul.msk.bf16.vlgmr.msra.gmra.mxu1 %vm227_vm0, %v244_v6 }
 0x1b4   : > { %v265_v12 = vpop.f32.mrf.mxu1 }
 0x1b5   : > { %v270_v13 = vsel %vm269_vm1, %v265_v12, -inf }
 0x1b6   : > { %271 = vmax.xlane.f32.xlu0 %v270_v13 }
 0x1bc   : > { %v267_v14 = vpop.f32.mrf.mxu1 }
 0x229   : > { %v272_v15 = vpop.xlane.xlu0 %271 }
 0x22a   : > { %v273_v16 = vsub.f32 %v265_v12, %v272_v15 }
 0x22c   : > { %v274_v17 = vmul.f32 1.442695, %v273_v16 }
 0x22e   : > { %490 = vpow2.f32 %v274_v17 }
 0x234   : > { %v491_v18 = vpop.eup %490 }
 0x235   : > { %v276_v19 = vsel %vm269_vm1, %v491_v18, 0.0 }
 0x236   : > { %277 = vadd.xlane.f32.xlu1 %v276_v19 }
 0x24f   : > { %282 = vrot.lane.b32.xlu1 %v247_v8, %s630_s17 }
 0x2a9   : > { %v278_v20 = vpop.xlane.xlu1 %277 }
 0x2aa   : > { %492 = vrcp.f32 %v278_v20 }
 0x2b0   : > { %v493_v21 = vpop.eup %492 }
 0x2b1   : > { %v280_v22 = vmul.f32 %v493_v21, %v491_v18 }
 0x2b3   : > { %v281_v25 = vpack.c.bf16 %v280_v22, %v280_v22 }
 0x2c1   : > { %v283_v23 = vpop.permute.xlu1 %282 }
 0x2c2   : > { %v289_v24 = vsel %vm287_vm2, %v283_v23, 0 }
 0x2c3   : > { %298 = vmatpush.bf16.msra.mxu2 %v289_v24 }
 0x2c6   : > { %421 = vmatmul.msk.bf16.vlgmr.msra.gmra.mxu2 %vm269_vm1, %v281_v25 }
 0x349   : > { %v300_v26 = vpop.f32.mrf.mxu2 }
 0x34a   : > { %304 = vst.msk [vmem:[%s204_s25] sm:$0xff] %vm227_vm0, %v300_v26 }
 0x34b   : > { %581 = shalt.err (!%p578_p9)
}
 0x34c   : > { %434 = dma.vmem_to_hbm [thread:$0]  (%p711_p13), %s319_s27, 128, %s321_s28, %s306_s7  }
 0x351   : > { %v302_v27 = vpop.f32.mrf.mxu2 }
 0x352 PF: > { %s332_s5 = sand.u32 1, %s612_s12   ;;  %p807_p10 = scmp.ge.s32.totalorder %s624_s15, 2 }
 0x353   : > { %s333_s30 = scalar_lea.sflag [#allocation4], %s332_s5 }
 0x354   : > { %p445_p11 = pnand %p807_p10, %p716_p4 }
 0x356   : > { %p446_p0 = pneg %p445_p11 }
 0x358   : > { %607 = dma.done.wait (%p446_p0), %s333_s30, 128  }
 0x359   : > { %609 = vsyncadd (%p446_p0), %s333_s30, 4294967168  ;;  %p17_p2 = scmp.ge.s32.totalorder %s691_s26, 4   ;;  %s808_s12 = smov %s616_s13 }
 0x35a   : > { %s809_s13 = smov %s620_s14  ;;  %s810_s14 = smov %s703_s29 }
 0x35b   : > { %s811_s15 = smov %s691_s26  ;;  %19 = sbr.rel (!%p17_p2) target bundleno = 6 (0x6), region = 81 }
 0x360   :  { %339 = vsyncpa [#allocation3], 1 }
 0x361   :  { %341 = vsyncpa [#allocation3 + $0x1], 1 }
 0x362   :  { %342 = vsyncpa [#allocation6], 1 }
 0x363   :  { %343 = vsyncpa [#allocation4], 1 }
 0x364   :  { %345 = vsyncpa [#allocation4 + $0x1], 1 }

</bundles_post_ra>
